<compile_context>
chip_gen: v5e
topology: v5e:2x2
jax: 0.10.0
libtpu: 0.0.40
codegen_flags: <defaults>
</compile_context>

<pallas_src>
import functools
import math

import jax
import jax.numpy as jnp
from jax.experimental import pallas as pl
from jax.experimental.pallas import tpu as pltpu


_VMEM_LIMIT_BYTES = 48 * 1024 * 1024  # < 64 MiB (v7x per-TC physical), ample headroom


def _round_up(x, m):
    return ((x + m - 1) // m) * m


def _cdiv(a, b):
    return (a + b - 1) // b


# ----------------------------------------------------------------------------
# Kernels
# ----------------------------------------------------------------------------
def _linear_kernel_single(x_ref, w_ref, b_ref, o_ref):
    """Full contraction in one pass: o = x @ W^T_tile + b."""
    acc = jnp.dot(x_ref[...], w_ref[...], preferred_element_type=jnp.float32)
    o_ref[...] = (acc + b_ref[...]).astype(o_ref.dtype)


def _linear_kernel_kred_f32(x_ref, w_ref, b_ref, o_ref):
    """K-reduction axis, f32 output: accumulate directly into the resident
    output block (no scratch); bias folded into k==0 init."""
    k = pl.program_id(2)

    @pl.when(k == 0)
    def _():
        o_ref[...] = jnp.broadcast_to(b_ref[...], o_ref.shape)

    o_ref[...] += jnp.dot(x_ref[...], w_ref[...],
                          preferred_element_type=jnp.float32)


def _linear_kernel_kred_acc(x_ref, w_ref, b_ref, o_ref, acc_ref):
    """K-reduction axis, narrow output dtype: f32 scratch accumulator."""
    k = pl.program_id(2)

    @pl.when(k == 0)
    def _():
        acc_ref[...] = jnp.broadcast_to(b_ref[...], acc_ref.shape)

    acc_ref[...] += jnp.dot(x_ref[...], w_ref[...],
                            preferred_element_type=jnp.float32)

    @pl.when(k == pl.num_programs(2) - 1)
    def _():
        o_ref[...] = acc_ref[...].astype(o_ref.dtype)


# ----------------------------------------------------------------------------
# Wrapper
# ----------------------------------------------------------------------------
@functools.partial(
    jax.jit,
    static_argnames=("tm_max", "tn_max", "tk_max", "k_single_max",
                     "w_resident_bytes", "use_bf16"))
def pallas_linear(x, weight, bias=None, *,
                  tm_max=512, tn_max=1024, tk_max=1024,
                  k_single_max=1024,
                  w_resident_bytes=8 * 1024 * 1024,
                  use_bf16=False):
    """y = x @ weight.T + bias.  weight: (out_dim, in_dim), bias: (out_dim,).

    use_bf16=True casts MXU inputs to bf16 (f32 accumulation, original output
    dtype).  This changes numerics vs the f32 PyTorch reference; use a looser
    tolerance if enabled.
    """
    orig_shape = x.shape
    K = orig_shape[-1]
    x2 = x.reshape(-1, K)
    M = x2.shape[0]
    N, K_w = weight.shape
    assert K_w == K, "weight in_dim must match x feature dim"
    out_dtype = x.dtype

    if use_bf16:
        x2 = x2.astype(jnp.bfloat16)
        weight = weight.astype(jnp.bfloat16)

    itemsize = jnp.dtype(x2.dtype).itemsize
    m_mult = 8 * max(1, 4 // itemsize)   # sublane packing: f32 -> 8, bf16 -> 16

    # Bias as an (1, N) f32 row (zeros if absent).
    b2 = (jnp.zeros((N,), jnp.float32) if bias is None
          else bias.astype(jnp.float32)).reshape(1, N)

    # One-time W^T -> (K, N): native MXU RHS orientation, no per-tile transpose.
    wt = weight.T

    # ---- M tiling: balanced blocks; >=2 blocks when big enough so both v7x
    # TensorCores get work (v5e/v6e unaffected beyond ~0.35us/step overhead).
    nblk_m = max(1, _cdiv(M, tm_max))
    if nblk_m == 1 and M >= 512:
        nblk_m = 2
    tm = min(_round_up(_cdiv(M, nblk_m), m_mult),
             _round_up(M, m_mult), tm_max)

    single_k = K <= k_single_max
    w_bytes = K * N * itemsize

    if single_k and w_bytes <= w_resident_bytes:
        # ---- Path A: weight-resident, grid over M only.  W and bias blocks
        # are constant across the grid -> DMA'd once; x streamed exactly once.
        grid = (_cdiv(M, tm),)
        grid_spec = pltpu.PrefetchScalarGridSpec(
            num_scalar_prefetch=0,
            grid=grid,
            in_specs=[
                pl.BlockSpec((tm, K), lambda i: (i, 0)),   # x tile (full K)
                pl.BlockSpec((K, N), lambda i: (0, 0)),    # full W^T, resident
                pl.BlockSpec((1, N), lambda i: (0, 0)),    # full bias, resident
            ],
            out_specs=pl.BlockSpec((tm, N), lambda i: (i, 0)),
        )
        kernel = _linear_kernel_single
        dim_sem = ("parallel",)
        scratch = None
    elif single_k:
        # ---- Path B: full K in one pass, but W too big to hold resident ->
        # tile over N as well.  No padding anywhere (edge blocks masked).
        tn = min(tn_max, _round_up(N, 128))
        grid = (_cdiv(M, tm), _cdiv(N, tn))
        grid_spec = pltpu.PrefetchScalarGridSpec(
            num_scalar_prefetch=0,
            grid=grid,
            in_specs=[
                pl.BlockSpec((tm, K), lambda i, j: (i, 0)),
                pl.BlockSpec((K, tn), lambda i, j: (0, j)),
                pl.BlockSpec((1, tn), lambda i, j: (0, j)),
            ],
            out_specs=pl.BlockSpec((tm, tn), lambda i, j: (i, j)),
        )
        kernel = _linear_kernel_single
        dim_sem = ("parallel", "parallel")
        scratch = None
    else:
        # ---- Path C: K-reduction grid axis.  K MUST be zero-padded to the
        # tile (OOB K columns would otherwise pollute valid outputs); M/N
        # overhang is left to masked edge blocks.
        tn = min(tn_max, _round_up(N, 128))
        nblk_k = max(1, _cdiv(K, tk_max))
        tk = _round_up(_cdiv(K, nblk_k), 128)        # balanced K blocks
        K_pad = _round_up(K, tk)
        if K_pad != K:
            x2 = jnp.pad(x2, ((0, 0), (0, K_pad - K)))
            wt = jnp.pad(wt, ((0, K_pad - K), (0, 0)))
        grid = (_cdiv(M, tm), _cdiv(N, tn), K_pad // tk)

        f32_out = out_dtype == jnp.float32
        kernel = _linear_kernel_kred_f32 if f32_out else _linear_kernel_kred_acc
        scratch = None if f32_out else [pltpu.VMEM((tm, tn), jnp.float32)]

        grid_spec = pltpu.PrefetchScalarGridSpec(
            num_scalar_prefetch=0,
            grid=grid,
            in_specs=[
                pl.BlockSpec((tm, tk), lambda i, j, k: (i, k)),
                pl.BlockSpec((tk, tn), lambda i, j, k: (k, j)),
                pl.BlockSpec((1, tn), lambda i, j, k: (0, j)),
            ],
            out_specs=pl.BlockSpec((tm, tn), lambda i, j, k: (i, j)),
            scratch_shapes=scratch if scratch is not None else (),
        )
        dim_sem = ("parallel", "parallel", "arbitrary")

    y = pl.pallas_call(
        kernel,
        out_shape=jax.ShapeDtypeStruct((M, N), out_dtype),
        grid_spec=grid_spec,
        compiler_params=pltpu.CompilerParams(
            dimension_semantics=dim_sem,
            vmem_limit_bytes=_VMEM_LIMIT_BYTES),
    )(x2, wt, b2)

    return y.reshape(orig_shape[:-1] + (N,))


def kaiming_uniform_init(key, shape, dtype=jnp.float32):
    """PyG/PyTorch kaiming_uniform_ with a=sqrt(5): bound = 1/sqrt(fan_in)."""
    fan_in = shape[1]
    bound = math.sqrt(1.0 / fan_in)
    return jax.random.uniform(key, shape, dtype=dtype, minval=-bound, maxval=bound)


if __name__ == "__main__":
    key = jax.random.PRNGKey(0)
    k_x, k_w, k_x2, k_wc, k_xc = jax.random.split(key, 5)

    num_nodes, in_dim, out_dim = 256, 64, 128

    x = jax.random.normal(k_x, (num_nodes, in_dim), dtype=jnp.float32)
    weight = kaiming_uniform_init(k_w, (out_dim, in_dim))
    bias = jnp.zeros((out_dim,), dtype=jnp.float32)  # bias_initializer='zeros'

    # Path A: weight-resident, single K pass (typical CoBFormer shape).
    y = pallas_linear(x, weight, bias)
    jax.block_until_ready(y)
    y_ref = x @ weight.T + bias
    assert y.shape == (num_nodes, out_dim)
    assert jnp.allclose(y, y_ref, atol=1e-4, rtol=1e-4), "mismatch (path A)"

    # Path A with non-divisible M (masked edge block, no host-side pad/slice).
    xr = jax.random.normal(k_x2, (num_nodes + 37, in_dim), dtype=jnp.float32)
    yr = pallas_linear(xr, weight, bias)
    jax.block_until_ready(yr)
    assert jnp.allclose(yr, xr @ weight.T + bias, atol=1e-4, rtol=1e-4), \
        "mismatch (path A, ragged M)"

    # Path B: single K pass, W forced out of the resident fast path.
    yb = pallas_linear(x, weight, bias, w_resident_bytes=1)
    jax.block_until_ready(yb)
    assert jnp.allclose(yb, y_ref, atol=1e-4, rtol=1e-4), "mismatch (path B)"

    # Path C: K-reduction grid axis (2 K steps), f32 in-place accumulation.
    in_dim_c = 256
    xc = jax.random.normal(k_xc, (64, in_dim_c), dtype=jnp.float32)
    wc = kaiming_uniform_init(k_wc, (out_dim, in_dim_c))
    yc = pallas_linear(xc, wc, bias, k_single_max=128, tk_max=128)
    jax.block_until_ready(yc)
    assert jnp.allclose(yc, xc @ wc.T + bias, atol=1e-4, rtol=1e-4), \
        "mismatch (path C)"

    print("KERNEL_OK")
</pallas_src>

<mosaic_0001>
module attributes {stable_mosaic.version = 11 : i64} {
  func.func @_linear_kernel_single(%arg0: i32, %arg1: memref<256x64xf32, #tpu.memory_space<vmem>>, %arg2: memref<64x128xf32, #tpu.memory_space<vmem>>, %arg3: memref<1x128xf32, #tpu.memory_space<vmem>>, %arg4: memref<256x128xf32, #tpu.memory_space<vmem>>) attributes {dimension_semantics = [#tpu.dimension_semantics<parallel>], iteration_bounds = array<i64: 1>, scalar_prefetch = 0 : i64, scratch_operands = 0 : i64, tpu.core_type = #tpu.core_type<tc>, window_params = [{transform_indices = @transform_0, window_bounds = array<i64: 256, 64>}, {pipeline_mode = #tpu.pipeline_mode<synchronous>, transform_indices = @transform_1, window_bounds = array<i64: 64, 128>}, {pipeline_mode = #tpu.pipeline_mode<synchronous>, transform_indices = @transform_2, window_bounds = array<i64: 1, 128>}, {transform_indices = @transform_3, window_bounds = array<i64: 256, 128>}]} {
    %c0 = arith.constant 0 : index
    %c0_0 = arith.constant 0 : index
    %0 = vector.load %arg1[%c0, %c0_0] : memref<256x64xf32, #tpu.memory_space<vmem>>, vector<256x64xf32>
    %c0_1 = arith.constant 0 : index
    %c0_2 = arith.constant 0 : index
    %1 = vector.load %arg2[%c0_1, %c0_2] : memref<64x128xf32, #tpu.memory_space<vmem>>, vector<64x128xf32>
    %cst = arith.constant dense<0.000000e+00> : vector<256x128xf32>
    %2 = tpu.matmul %0, %1, %cst {dimension_numbers = #tpu.dot_dimension_numbers<[1], [0], [0], [1], [0, 0, 1, 1], [], []>} : vector<256x64xf32>, vector<64x128xf32>, vector<256x128xf32> -> vector<256x128xf32>
    %c0_3 = arith.constant 0 : index
    %c0_4 = arith.constant 0 : index
    %3 = vector.load %arg3[%c0_3, %c0_4] : memref<1x128xf32, #tpu.memory_space<vmem>>, vector<1x128xf32>
    %4 = vector.broadcast %3 : vector<1x128xf32> to vector<256x128xf32>
    %5 = arith.addf %2, %4 : vector<256x128xf32>
    %c0_5 = arith.constant 0 : index
    %c0_6 = arith.constant 0 : index
    %6 = vector.load %arg4[%c0_5, %c0_6] : memref<256x128xf32, #tpu.memory_space<vmem>>, vector<256x128xf32>
    tpu.vector_store %arg4[%c0_5, %c0_6], %5 {strides = array<i32>} : memref<256x128xf32, #tpu.memory_space<vmem>>, vector<256x128xf32>,
    return
  }
  func.func @transform_0(%arg0: i32) -> (i32, i32) {
    %c0_i32 = arith.constant 0 : i32
    %c0_i32_0 = arith.constant 0 : i32
    return %arg0, %c0_i32 : i32, i32
  }
  func.func @transform_1(%arg0: i32) -> (i32, i32) {
    %c0_i32 = arith.constant 0 : i32
    %c0_i32_0 = arith.constant 0 : i32
    %c0_i32_1 = arith.constant 0 : i32
    return %c0_i32, %c0_i32_0 : i32, i32
  }
  func.func @transform_2(%arg0: i32) -> (i32, i32) {
    %c0_i32 = arith.constant 0 : i32
    %c0_i32_0 = arith.constant 0 : i32
    %c0_i32_1 = arith.constant 0 : i32
    return %c0_i32, %c0_i32_0 : i32, i32
  }
  func.func @transform_3(%arg0: i32) -> (i32, i32) {
    %c0_i32 = arith.constant 0 : i32
    %c0_i32_0 = arith.constant 0 : i32
    return %arg0, %c0_i32 : i32, i32
  }
}

</mosaic_0001>

<bundles_post_ra>
// kernel: pallas_linear.1
= control target key start
LH: loop header
LB: loop body
LE: loop exit
PB: predicated region body
PF: predicated region fallthrough
CT: control target
= control target key end

     0   :  { %s620_s0 = inlined_call_operand.vmem [shape: f32[256,64], index: 0, kind: input, shape index: {}]   ;;  %s621_s1 = inlined_call_operand.vmem [shape: f32[64,128], index: 1, kind: input, shape index: {}]   ;;  %s622_s2 = inlined_call_operand.vmem [shape: f32[1,128], index: 2, kind: input, shape index: {}]   ;;  %s623_s3 = inlined_call_operand.hbm [shape: f32[256,128], index: 3, kind: output, shape index: {}]  }
   0x1   :  { %v54_v0 = vld [vmem:[%s621_s1 + $0x38] sm:$0xff]  ;;  %v53_v1 = vld [vmem:[%s621_s1 + $0x30] sm:$0xff]  ;;  %v52_v2 = vld [vmem:[%s621_s1 + $0x28] sm:$0xff] }
   0x2   :  { %352 = vmatpush.msra.mxu2 %v54_v0  ;;  %353 = vmatpush.msra.mxu3 %v54_v0  ;;  %v51_v3 = vld [vmem:[%s621_s1 + $0x20] sm:$0xff]  ;;  %v50_v4 = vld [vmem:[%s621_s1 + $0x18] sm:$0xff] }
   0x3   :  { %164 = vmatpush.msra.mxu0 %v54_v0  ;;  %351 = vmatpush.msra.mxu1 %v54_v0 }
   0x4   :  { %355 = vmatpush.msra.mxu2 %v53_v1  ;;  %356 = vmatpush.msra.mxu3 %v53_v1 }
   0x5   :  { %165 = vmatpush.msra.mxu0 %v53_v1  ;;  %354 = vmatpush.msra.mxu1 %v53_v1 }
   0x6   :  { %358 = vmatpush.msra.mxu2 %v52_v2  ;;  %359 = vmatpush.msra.mxu3 %v52_v2 }
   0x7   :  { %166 = vmatpush.msra.mxu0 %v52_v2  ;;  %357 = vmatpush.msra.mxu1 %v52_v2 }
   0x8   :  { %361 = vmatpush.msra.mxu2 %v51_v3  ;;  %362 = vmatpush.msra.mxu3 %v51_v3 }
   0x9   :  { %8 = vsyncpa [#allocation3], 0  ;;  %v49_v5 = vld [vmem:[%s621_s1 + $0x10] sm:$0xff]  ;;  %167 = vmatpush.msra.mxu0 %v51_v3  ;;  %360 = vmatpush.msra.mxu1 %v51_v3  ;;  %v48_v6 = vld [vmem:[%s621_s1 + $0x8] sm:$0xff]  ;;  %vm59_vm0 = vcmask 523264   ;;  %s307_s12 = sshll.u32 %s623_s3, 4  ;;  %s308_s12 = int_to_ptr.hbm [resolvable:$true] %s307_s12 }
   0xa   :  { %364 = vmatpush.msra.mxu2 %v50_v4  ;;  %365 = vmatpush.msra.mxu3 %v50_v4  ;;  %v47_v7 = vld [vmem:[%s621_s1] sm:$0xff]  ;;  %v32_v12 = vld [vmem:[%s620_s0 + $0x88] sm:$0xff]  ;;  %v33_v16 = vld [vmem:[%s620_s0 + $0x90] sm:$0xff]  ;;  %s406_s13 = smov 128   ;;  %s407_s14 = smov 8  }
   0xb   :  { %168 = vmatpush.msra.mxu0 %v50_v4  ;;  %363 = vmatpush.msra.mxu1 %v50_v4  ;;  %v31_v8 = vld [vmem:[%s620_s0 + $0x80] sm:$0xff]  ;;  %v40_v13 = vld [vmem:[%s620_s0 + $0xc8] sm:$0xff]  ;;  %v41_v17 = vld [vmem:[%s620_s0 + $0xd0] sm:$0xff] }
   0xc   :  { %367 = vmatpush.msra.mxu2 %v49_v5  ;;  %368 = vmatpush.msra.mxu3 %v49_v5  ;;  %v39_v9 = vld [vmem:[%s620_s0 + $0xc0] sm:$0xff]  ;;  %v16_v14 = vld [vmem:[%s620_s0 + $0x8] sm:$0xff]  ;;  %v17_v18 = vld [vmem:[%s620_s0 + $0x10] sm:$0xff] }
   0xd   :  { %169 = vmatpush.msra.mxu0 %v49_v5  ;;  %366 = vmatpush.msra.mxu1 %v49_v5  ;;  %v15_v10 = vld [vmem:[%s620_s0] sm:$0xff]  ;;  %v24_v15 = vld [vmem:[%s620_s0 + $0x48] sm:$0xff]  ;;  %v25_v19 = vld [vmem:[%s620_s0 + $0x50] sm:$0xff] }
   0xe   :  { %370 = vmatpush.msra.mxu2 %v48_v6  ;;  %371 = vmatpush.msra.mxu3 %v48_v6  ;;  %v23_v11 = vld [vmem:[%s620_s0 + $0x40] sm:$0xff]  ;;  %v34_v20 = vld [vmem:[%s620_s0 + $0x98] sm:$0xff]  ;;  %v36_v28 = vld [vmem:[%s620_s0 + $0xa8] sm:$0xff] }
   0xf   :  { %170 = vmatpush.msra.mxu0 %v48_v6  ;;  %369 = vmatpush.msra.mxu1 %v48_v6  ;;  %v42_v21 = vld [vmem:[%s620_s0 + $0xd8] sm:$0xff]  ;;  %v35_v24 = vld [vmem:[%s620_s0 + $0xa0] sm:$0xff]  ;;  %v44_v29 = vld [vmem:[%s620_s0 + $0xe8] sm:$0xff] }
  0x10   :  { %373 = vmatpush.msra.mxu2 %v47_v7  ;;  %374 = vmatpush.msra.mxu3 %v47_v7  ;;  %v18_v22 = vld [vmem:[%s620_s0 + $0x18] sm:$0xff]  ;;  %v43_v25 = vld [vmem:[%s620_s0 + $0xe0] sm:$0xff]  ;;  %v20_v30 = vld [vmem:[%s620_s0 + $0x28] sm:$0xff] }
  0x11   :  { %335 = vmatmul.msk.f32.vlgmr.msra.gmra.mxu2 %vm59_vm0, %v31_v8  ;;  %343 = vmatmul.msk.f32.vlgmr.msra.gmra.mxu3 %vm59_vm0, %v39_v9  ;;  %v26_v23 = vld [vmem:[%s620_s0 + $0x58] sm:$0xff]  ;;  %v19_v26 = vld [vmem:[%s620_s0 + $0x20] sm:$0xff]  ;;  %v28_v31 = vld [vmem:[%s620_s0 + $0x68] sm:$0xff] }
  0x12   :  { %171 = vmatpush.msra.mxu0 %v47_v7  ;;  %372 = vmatpush.msra.mxu1 %v47_v7  ;;  %v27_v27 = vld [vmem:[%s620_s0 + $0x60] sm:$0xff]  ;;  %v37_v32 = vld [vmem:[%s620_s0 + $0xb0] sm:$0xff]  ;;  %v38_v36 = vld [vmem:[%s620_s0 + $0xb8] sm:$0xff] }
  0x13   :  { %319 = vmatmul.msk.f32.vlgmr.msra.gmra.mxu0 %vm59_vm0, %v15_v10  ;;  %327 = vmatmul.msk.f32.vlgmr.msra.gmra.mxu1 %vm59_vm0, %v23_v11  ;;  %v45_v33 = vld [vmem:[%s620_s0 + $0xf0] sm:$0xff]  ;;  %v46_v37 = vld [vmem:[%s620_s0 + $0xf8] sm:$0xff]  ;;  %v583_v40 = vld [vmem:[%s622_s2] ss:$0 sm:$0xff] }
  0x14   :  { %v21_v34 = vld [vmem:[%s620_s0 + $0x30] sm:$0xff]  ;;  %v22_v38 = vld [vmem:[%s620_s0 + $0x38] sm:$0xff] }
  0x15   :  { %v29_v35 = vld [vmem:[%s620_s0 + $0x70] sm:$0xff]  ;;  %v30_v39 = vld [vmem:[%s620_s0 + $0x78] sm:$0xff]  ;;  %s405_s0 = smov [#allocation2]  }
  0x16   :  { %s305_s2 = sshll.u32 %s405_s0, 4  ;;  %s306_s2 = int_to_ptr.vmem [resolvable:$true] %s305_s2 }
  0x19   :  { %336 = vmatmul.msk.f32.gmra.mxu2 %vm59_vm0, %v32_v12  ;;  %344 = vmatmul.msk.f32.gmra.mxu3 %vm59_vm0, %v40_v13 }
  0x1b   :  { %320 = vmatmul.msk.f32.gmra.mxu0 %vm59_vm0, %v16_v14  ;;  %328 = vmatmul.msk.f32.gmra.mxu1 %vm59_vm0, %v24_v15 }
  0x21   :  { %337 = vmatmul.msk.f32.gmra.mxu2 %vm59_vm0, %v33_v16  ;;  %345 = vmatmul.msk.f32.gmra.mxu3 %vm59_vm0, %v41_v17 }
  0x23   :  { %321 = vmatmul.msk.f32.gmra.mxu0 %vm59_vm0, %v17_v18  ;;  %329 = vmatmul.msk.f32.gmra.mxu1 %vm59_vm0, %v25_v19 }
  0x29   :  { %338 = vmatmul.msk.f32.gmra.mxu2 %vm59_vm0, %v34_v20  ;;  %346 = vmatmul.msk.f32.gmra.mxu3 %vm59_vm0, %v42_v21 }
  0x2b   :  { %322 = vmatmul.msk.f32.gmra.mxu0 %vm59_vm0, %v18_v22  ;;  %330 = vmatmul.msk.f32.gmra.mxu1 %vm59_vm0, %v26_v23 }
  0x31   :  { %339 = vmatmul.msk.f32.gmra.mxu2 %vm59_vm0, %v35_v24  ;;  %347 = vmatmul.msk.f32.gmra.mxu3 %vm59_vm0, %v43_v25 }
  0x33   :  { %323 = vmatmul.msk.f32.gmra.mxu0 %vm59_vm0, %v19_v26  ;;  %331 = vmatmul.msk.f32.gmra.mxu1 %vm59_vm0, %v27_v27 }
  0x39   :  { %340 = vmatmul.msk.f32.gmra.mxu2 %vm59_vm0, %v36_v28  ;;  %348 = vmatmul.msk.f32.gmra.mxu3 %vm59_vm0, %v44_v29 }
  0x3b   :  { %324 = vmatmul.msk.f32.gmra.mxu0 %vm59_vm0, %v20_v30  ;;  %332 = vmatmul.msk.f32.gmra.mxu1 %vm59_vm0, %v28_v31 }
  0x41   :  { %341 = vmatmul.msk.f32.gmra.mxu2 %vm59_vm0, %v37_v32  ;;  %349 = vmatmul.msk.f32.gmra.mxu3 %vm59_vm0, %v45_v33 }
  0x43   :  { %325 = vmatmul.msk.f32.gmra.mxu0 %vm59_vm0, %v21_v34  ;;  %333 = vmatmul.msk.f32.gmra.mxu1 %vm59_vm0, %v29_v35 }
  0x49   :  { %342 = vmatmul.msk.f32.gmra.mxu2 %vm59_vm0, %v38_v36  ;;  %350 = vmatmul.msk.f32.gmra.mxu3 %vm59_vm0, %v46_v37 }
  0x4b   :  { %326 = vmatmul.msk.f32.gmra.mxu0 %vm59_vm0, %v22_v38  ;;  %334 = vmatmul.msk.f32.gmra.mxu1 %vm59_vm0, %v30_v39 }
  0x90   :  { %v173_v41 = vpop.f32.mrf.mxu0  ;;  %v197_v42 = vpop.f32.mrf.mxu1 }
  0x91   :  { %v174_v43 = vadd.f32 %v583_v40, %v173_v41  ;;  %v198_v44 = vadd.f32 %v583_v40, %v197_v42 }
  0x93   :  { %269 = vst [vmem:[#allocation2] sm:$0xff] %v174_v43 }
  0x94   :  { %277 = vst [vmem:[#allocation2 + $0x40] sm:$0xff] %v198_v44  ;;  %v221_v45 = vpop.f32.mrf.mxu2  ;;  %v245_v46 = vpop.f32.mrf.mxu3 }
  0x95   :  { %v222_v47 = vadd.f32 %v583_v40, %v221_v45  ;;  %v246_v48 = vadd.f32 %v583_v40, %v245_v46 }
  0x97   :  { %285 = vst [vmem:[#allocation2 + $0x80] sm:$0xff] %v222_v47 }
  0x98   :  { %293 = vst [vmem:[#allocation2 + $0xc0] sm:$0xff] %v246_v48  ;;  %v176_v49 = vpop.f32.mrf.mxu0  ;;  %v200_v50 = vpop.f32.mrf.mxu1 }
  0x99   :  { %v177_v51 = vadd.f32 %v583_v40, %v176_v49  ;;  %v201_v52 = vadd.f32 %v583_v40, %v200_v50 }
  0x9b   :  { %270 = vst [vmem:[#allocation2 + $0x8] sm:$0xff] %v177_v51 }
  0x9c   :  { %278 = vst [vmem:[#allocation2 + $0x48] sm:$0xff] %v201_v52  ;;  %v224_v53 = vpop.f32.mrf.mxu2  ;;  %v248_v54 = vpop.f32.mrf.mxu3 }
  0x9d   :  { %v225_v55 = vadd.f32 %v583_v40, %v224_v53  ;;  %v249_v56 = vadd.f32 %v583_v40, %v248_v54 }
  0x9f   :  { %286 = vst [vmem:[#allocation2 + $0x88] sm:$0xff] %v225_v55 }
  0xa0   :  { %294 = vst [vmem:[#allocation2 + $0xc8] sm:$0xff] %v249_v56  ;;  %v179_v57 = vpop.f32.mrf.mxu0  ;;  %v203_v58 = vpop.f32.mrf.mxu1 }
  0xa1   :  { %v180_v59 = vadd.f32 %v583_v40, %v179_v57  ;;  %v204_v60 = vadd.f32 %v583_v40, %v203_v58 }
  0xa3   :  { %271 = vst [vmem:[#allocation2 + $0x10] sm:$0xff] %v180_v59 }
  0xa4   :  { %279 = vst [vmem:[#allocation2 + $0x50] sm:$0xff] %v204_v60  ;;  %v227_v61 = vpop.f32.mrf.mxu2  ;;  %v251_v62 = vpop.f32.mrf.mxu3 }
  0xa5   :  { %v228_v63 = vadd.f32 %v583_v40, %v227_v61  ;;  %v252_v0 = vadd.f32 %v583_v40, %v251_v62 }
  0xa7   :  { %287 = vst [vmem:[#allocation2 + $0x90] sm:$0xff] %v228_v63 }
  0xa8   :  { %295 = vst [vmem:[#allocation2 + $0xd0] sm:$0xff] %v252_v0  ;;  %v182_v1 = vpop.f32.mrf.mxu0  ;;  %v206_v2 = vpop.f32.mrf.mxu1 }
  0xa9   :  { %v183_v3 = vadd.f32 %v583_v40, %v182_v1  ;;  %v207_v4 = vadd.f32 %v583_v40, %v206_v2 }
  0xab   :  { %272 = vst [vmem:[#allocation2 + $0x18] sm:$0xff] %v183_v3 }
  0xac   :  { %280 = vst [vmem:[#allocation2 + $0x58] sm:$0xff] %v207_v4  ;;  %v230_v5 = vpop.f32.mrf.mxu2  ;;  %v254_v6 = vpop.f32.mrf.mxu3 }
  0xad   :  { %v231_v7 = vadd.f32 %v583_v40, %v230_v5  ;;  %v255_v8 = vadd.f32 %v583_v40, %v254_v6 }
  0xaf   :  { %288 = vst [vmem:[#allocation2 + $0x98] sm:$0xff] %v231_v7 }
  0xb0   :  { %296 = vst [vmem:[#allocation2 + $0xd8] sm:$0xff] %v255_v8  ;;  %v185_v9 = vpop.f32.mrf.mxu0  ;;  %v209_v10 = vpop.f32.mrf.mxu1 }
  0xb1   :  { %v186_v11 = vadd.f32 %v583_v40, %v185_v9  ;;  %v210_v12 = vadd.f32 %v583_v40, %v209_v10 }
  0xb3   :  { %273 = vst [vmem:[#allocation2 + $0x20] sm:$0xff] %v186_v11 }
  0xb4   :  { %281 = vst [vmem:[#allocation2 + $0x60] sm:$0xff] %v210_v12  ;;  %v233_v13 = vpop.f32.mrf.mxu2  ;;  %v257_v14 = vpop.f32.mrf.mxu3 }
  0xb5   :  { %v234_v15 = vadd.f32 %v583_v40, %v233_v13  ;;  %v258_v16 = vadd.f32 %v583_v40, %v257_v14 }
  0xb7   :  { %289 = vst [vmem:[#allocation2 + $0xa0] sm:$0xff] %v234_v15 }
  0xb8   :  { %297 = vst [vmem:[#allocation2 + $0xe0] sm:$0xff] %v258_v16  ;;  %v188_v17 = vpop.f32.mrf.mxu0  ;;  %v212_v18 = vpop.f32.mrf.mxu1 }
  0xb9   :  { %v189_v19 = vadd.f32 %v583_v40, %v188_v17  ;;  %v213_v20 = vadd.f32 %v583_v40, %v212_v18 }
  0xbb   :  { %274 = vst [vmem:[#allocation2 + $0x28] sm:$0xff] %v189_v19 }
  0xbc   :  { %282 = vst [vmem:[#allocation2 + $0x68] sm:$0xff] %v213_v20  ;;  %v236_v21 = vpop.f32.mrf.mxu2  ;;  %v260_v22 = vpop.f32.mrf.mxu3 }
  0xbd   :  { %v237_v23 = vadd.f32 %v583_v40, %v236_v21  ;;  %v261_v24 = vadd.f32 %v583_v40, %v260_v22 }
  0xbf   :  { %290 = vst [vmem:[#allocation2 + $0xa8] sm:$0xff] %v237_v23 }
  0xc0   :  { %298 = vst [vmem:[#allocation2 + $0xe8] sm:$0xff] %v261_v24  ;;  %v191_v25 = vpop.f32.mrf.mxu0  ;;  %v215_v26 = vpop.f32.mrf.mxu1 }
  0xc1   :  { %v192_v27 = vadd.f32 %v583_v40, %v191_v25  ;;  %v216_v28 = vadd.f32 %v583_v40, %v215_v26 }
  0xc3   :  { %275 = vst [vmem:[#allocation2 + $0x30] sm:$0xff] %v192_v27 }
  0xc4   :  { %283 = vst [vmem:[#allocation2 + $0x70] sm:$0xff] %v216_v28  ;;  %v239_v29 = vpop.f32.mrf.mxu2  ;;  %v263_v30 = vpop.f32.mrf.mxu3 }
  0xc5   :  { %v240_v31 = vadd.f32 %v583_v40, %v239_v29  ;;  %v264_v32 = vadd.f32 %v583_v40, %v263_v30 }
  0xc7   :  { %291 = vst [vmem:[#allocation2 + $0xb0] sm:$0xff] %v240_v31 }
  0xc8   :  { %299 = vst [vmem:[#allocation2 + $0xf0] sm:$0xff] %v264_v32  ;;  %v194_v33 = vpop.f32.mrf.mxu0  ;;  %v218_v34 = vpop.f32.mrf.mxu1 }
  0xc9   :  { %v195_v35 = vadd.f32 %v583_v40, %v194_v33  ;;  %v219_v36 = vadd.f32 %v583_v40, %v218_v34 }
  0xcb   :  { %276 = vst [vmem:[#allocation2 + $0x38] sm:$0xff] %v195_v35 }
  0xcc   :  { %284 = vst [vmem:[#allocation2 + $0x78] sm:$0xff] %v219_v36  ;;  %v242_v37 = vpop.f32.mrf.mxu2  ;;  %v266_v38 = vpop.f32.mrf.mxu3 }
  0xcd   :  { %v243_v39 = vadd.f32 %v583_v40, %v242_v37  ;;  %v267_v41 = vadd.f32 %v583_v40, %v266_v38 }
  0xcf   :  { %292 = vst [vmem:[#allocation2 + $0xb8] sm:$0xff] %v243_v39 }
  0xd0   :  { %300 = vst [vmem:[#allocation2 + $0xf8] sm:$0xff] %v267_v41 }
  0xd1   :  { %313 = dma.vmem_to_hbm [thread:$0]  %s306_s2, 4096, %s308_s12, [#allocation3], %s406_s13, %s406_s13, %s407_s14  }
  0xd2   :  { %403 = dma.done.wait [#allocation3], 4096  }
  0xd3   :  { %404 = vsyncadd [#allocation3], 4294963200 }
  0xd4   :  { %318 = vsyncpa [#allocation3], 1 }

</bundles_post_ra>
